<compile_context>
chip_gen: v6e
topology: v6e:2x2x1
jax: 0.10.0
libtpu: 0.0.40
codegen_flags: <defaults>
</compile_context>

<pallas_src>
import math

import jax
import jax.numpy as jnp
from jax.experimental import pallas as pl
from jax.experimental.pallas import tpu as pltpu

# Feature sizes from the module definition.
D_IN, D_EXP, D_HID = 25, 64, 128
D_OUT_PAD = 128                      # lane-dense output width (real data in first 25 lanes)

_SQRT_HALF = 1.0 / math.sqrt(2.0)
_TANH_C = math.sqrt(2.0 / math.pi)


def _gelu(x, approx):
    if approx:
        # tanh form -> EUP slot (keeps the VALU free); behind a flag since
        # torch.nn.GELU() default is the exact erf form.
        return 0.5 * x * (1.0 + jnp.tanh(_TANH_C * (x + 0.044715 * x * x * x)))
    return 0.5 * x * (1.0 + jax.lax.erf(x * _SQRT_HALF))


def _make_kernel(use_bf16_matmul, approx_gelu):
    def unet_kernel(x_ref, temb_ref,
                    w0_ref, b0_ref,   # expand   : 25  -> 64
                    w1_ref, b1_ref,   # hidden1  : 64  -> 128
                    w2_ref, b2_ref,   # hidden2  : 128 -> 128
                    w3_ref, b3_ref,   # hidden3  : 128 -> 64
                    w4_ref, b4_ref,   # compress : 64  -> 128 (25 zero-padded to 128 lanes)
                    out_ref):
        def matmul(a, w_ref):
            # MXU matmul with f32 accumulation; only MXU operands are bf16,
            # all VPU/EUP math stays f32 (safe on v5e: no bf16 VALU/EUP).
            if use_bf16_matmul:
                a = a.astype(jnp.bfloat16)
            return jnp.dot(a, w_ref[...], preferred_element_type=jnp.float32)

        x = x_ref[...].astype(jnp.float32)

        skip1 = _gelu(matmul(x, w0_ref) + b0_ref[...], approx_gelu)

        h = _gelu(matmul(skip1, w1_ref) + b1_ref[...], approx_gelu)
        h = h + temb_ref[...].astype(jnp.float32)

        h = _gelu(matmul(h, w2_ref) + b2_ref[...], approx_gelu)
        h = _gelu(matmul(h, w3_ref) + b3_ref[...], approx_gelu)
        h = h + skip1

        out = matmul(h, w4_ref) + b4_ref[...]
        out_ref[...] = out.astype(out_ref.dtype)   # full 128-lane (unmasked) store

    return unet_kernel


def _round_up(n, m):
    return ((n + m - 1) // m) * m


def _tpu_profile():
    try:
        kind = jax.devices()[0].device_kind.lower()
    except Exception:
        kind = ""
    if "v7" in kind:
        # 2 TensorCores/chip, 64 MiB VMEM: even grid so both TCs stay loaded.
        return {"max_tile": 2048, "even_grid": True, "vmem_cap": 40 * (1 << 20)}
    # v5e / v6e: single TC, 128 MiB VMEM: fewer, larger tiles.
    return {"max_tile": 4096, "even_grid": False, "vmem_cap": 64 * (1 << 20)}


def _choose_batch_tile(batch, max_tile, even_grid):
    """Single step for small B; large tiles otherwise; even grid on v7x."""
    if batch <= 64:
        return _round_up(max(batch, 8), 8)
    if even_grid and batch > 128:
        steps = max(2, -(-batch // max_tile))
        if steps % 2:
            steps += 1
        return max(8, _round_up(-(-batch // steps), 8))
    return max(8, min(max_tile, _round_up(batch, 8)))


def extended_linear_unet(x, time_emb, params, *, batch_tile=None,
                         use_bf16_matmul=True, approx_gelu=False,
                         stream_bf16_inputs=False):
    """Fused forward pass. x: (B, 25), time_emb: (B, 128) -> (B, 25)."""
    B = x.shape[0]
    assert x.shape == (B, D_IN) and time_emb.shape == (B, D_HID)
    out_dtype = x.dtype

    prof = _tpu_profile()
    if batch_tile is None:
        batch_tile = _choose_batch_tile(B, prof["max_tile"], prof["even_grid"])
    batch_tile = max(8, _round_up(int(batch_tile), 8))   # f32 sublane alignment

    b_pad = pl.cdiv(B, batch_tile) * batch_tile
    if b_pad != B:
        pad = b_pad - B
        x = jnp.pad(x, ((0, pad), (0, 0)))
        time_emb = jnp.pad(time_emb, ((0, pad), (0, 0)))

    stream_dtype = jnp.bfloat16 if stream_bf16_inputs else jnp.float32
    x_in = x.astype(stream_dtype)
    t_in = time_emb.astype(stream_dtype)

    w_dtype = jnp.bfloat16 if use_bf16_matmul else jnp.float32
    flat_params = []
    for li, (w, b) in enumerate(params):
        w = jnp.asarray(w, jnp.float32)
        b = jnp.asarray(b, jnp.float32).reshape(1, -1)
        if li == 4:
            # Lane-dense output: zero-pad the compress layer 25 -> 128 columns.
            w = jnp.pad(w, ((0, 0), (0, D_OUT_PAD - D_IN)))
            b = jnp.pad(b, ((0, 0), (0, D_OUT_PAD - D_IN)))
        flat_params += [w.astype(w_dtype), b]
    param_shapes = [p.shape for p in flat_params]

    def batch_spec(feat):
        return pl.BlockSpec((batch_tile, feat), lambda i: (i, 0))

    def const_spec(shape):
        return pl.BlockSpec(shape, lambda i: (0, 0))

    in_specs = [batch_spec(D_IN), batch_spec(D_HID)]
    in_specs += [const_spec(s) for s in param_shapes]

    flops = 2 * b_pad * (D_IN * D_EXP + D_EXP * D_HID + D_HID * D_HID
                         + D_HID * D_EXP + D_EXP * D_OUT_PAD)
    transcendentals = b_pad * (D_EXP + D_HID + D_HID + D_EXP)   # one per GELU elem
    bytes_accessed = (x_in.size * x_in.dtype.itemsize
                      + t_in.size * t_in.dtype.itemsize
                      + b_pad * D_OUT_PAD * 4
                      + sum(int(p.size) * p.dtype.itemsize for p in flat_params))
    cost = pl.CostEstimate(flops=int(flops),
                           transcendentals=int(transcendentals),
                           bytes_accessed=int(bytes_accessed))

    # VMEM budget: lane-padded f32 rows for x/temb/out (double-buffered) plus
    # ~6 live f32 intermediates per row; weights are ~150 KB and negligible.
    est = batch_tile * 128 * 4 * (3 * 2 + 6)
    vmem_limit = int(min(prof["vmem_cap"], max(32 * (1 << 20), 2 * est)))

    out = pl.pallas_call(
        _make_kernel(use_bf16_matmul, approx_gelu),
        out_shape=jax.ShapeDtypeStruct((b_pad, D_OUT_PAD), jnp.float32),
        grid_spec=pltpu.PrefetchScalarGridSpec(
            num_scalar_prefetch=0,
            grid=(b_pad // batch_tile,),
            in_specs=in_specs,
            out_specs=batch_spec(D_OUT_PAD),
        ),
        compiler_params=pltpu.CompilerParams(
            dimension_semantics=("parallel",),
            vmem_limit_bytes=vmem_limit),
        cost_estimate=cost,
    )(x_in, t_in, *flat_params)

    return out[:B, :D_IN].astype(out_dtype)


def init_linear(key, fan_in, fan_out):
    """Matches torch.nn.Linear default init U(-1/sqrt(in), 1/sqrt(in)).

    Returns (W, b) with W transposed to (in, out) and b as (1, out)."""
    kw, kb = jax.random.split(key)
    bound = 1.0 / math.sqrt(fan_in)
    w = jax.random.uniform(kw, (fan_in, fan_out), jnp.float32, -bound, bound)
    b = jax.random.uniform(kb, (1, fan_out), jnp.float32, -bound, bound)
    return w, b


def reference_forward(x, time_emb, params):
    (w0, b0), (w1, b1), (w2, b2), (w3, b3), (w4, b4) = params
    gelu = lambda v: jax.nn.gelu(v, approximate=False)
    skip1 = gelu(x @ w0 + b0)
    h = gelu(skip1 @ w1 + b1)
    h = h + time_emb
    h = gelu(h @ w2 + b2)
    h = gelu(h @ w3 + b3)
    h = h + skip1
    return h @ w4 + b4


if __name__ == "__main__":
    key = jax.random.PRNGKey(0)
    k_x, k_t, k0, k1, k2, k3, k4 = jax.random.split(key, 7)

    B = 16
    x = jax.random.normal(k_x, (B, D_IN), jnp.float32)
    time_emb = jax.random.normal(k_t, (B, D_HID), jnp.float32)

    params = (
        init_linear(k0, D_IN, D_EXP),    # expand
        init_linear(k1, D_EXP, D_HID),   # hidden1
        init_linear(k2, D_HID, D_HID),   # hidden2
        init_linear(k3, D_HID, D_EXP),   # hidden3
        init_linear(k4, D_EXP, D_IN),    # compress
    )

    ref = reference_forward(x, time_emb, params)

    # Default path: bf16 MXU operands, f32 accumulation, exact-erf GELU.
    out = jax.block_until_ready(extended_linear_unet(x, time_emb, params))
    assert out.shape == (B, D_IN)
    assert jnp.allclose(out, ref, atol=1e-1, rtol=1e-1), "bf16 default path mismatch"

    # f32 MXU path: tight parity with the exact-GELU reference.
    out_f32 = jax.block_until_ready(
        extended_linear_unet(x, time_emb, params, use_bf16_matmul=False))
    assert jnp.allclose(out_f32, ref, atol=1e-5, rtol=1e-5), "f32 path mismatch"

    # tanh-approx GELU path (EUP); loose tolerance vs. the exact reference.
    out_tanh = jax.block_until_ready(
        extended_linear_unet(x, time_emb, params, approx_gelu=True))
    assert jnp.allclose(out_tanh, ref, atol=1e-1, rtol=1e-1), "approx-gelu path mismatch"

    # Ragged batch with a forced small tile: exercises padding + multi-step grid.
    B2 = 100
    x2 = jax.random.normal(k_x, (B2, D_IN), jnp.float32)
    t2 = jax.random.normal(k_t, (B2, D_HID), jnp.float32)
    out2 = jax.block_until_ready(
        extended_linear_unet(x2, t2, params, use_bf16_matmul=False, batch_tile=8))
    assert jnp.allclose(out2, reference_forward(x2, t2, params),
                        atol=1e-5, rtol=1e-5), "padded-batch mismatch"

    print("KERNEL_OK")
</pallas_src>

<mosaic_0001>
module attributes {stable_mosaic.version = 11 : i64} {
  func.func @unet_kernel(%arg0: i32, %arg1: memref<16x25xf32, #tpu.memory_space<vmem>>, %arg2: memref<16x128xf32, #tpu.memory_space<vmem>>, %arg3: memref<25x64xbf16, #tpu.memory_space<vmem>>, %arg4: memref<1x64xf32, #tpu.memory_space<vmem>>, %arg5: memref<64x128xbf16, #tpu.memory_space<vmem>>, %arg6: memref<1x128xf32, #tpu.memory_space<vmem>>, %arg7: memref<128x128xbf16, #tpu.memory_space<vmem>>, %arg8: memref<1x128xf32, #tpu.memory_space<vmem>>, %arg9: memref<128x64xbf16, #tpu.memory_space<vmem>>, %arg10: memref<1x64xf32, #tpu.memory_space<vmem>>, %arg11: memref<64x128xbf16, #tpu.memory_space<vmem>>, %arg12: memref<1x128xf32, #tpu.memory_space<vmem>>, %arg13: memref<16x128xf32, #tpu.memory_space<vmem>>) attributes {dimension_semantics = [#tpu.dimension_semantics<parallel>], iteration_bounds = array<i64: 1>, scalar_prefetch = 0 : i64, scratch_operands = 0 : i64, tpu.core_type = #tpu.core_type<tc>, window_params = [{transform_indices = @transform_0, window_bounds = array<i64: 16, 25>}, {transform_indices = @transform_1, window_bounds = array<i64: 16, 128>}, {pipeline_mode = #tpu.pipeline_mode<synchronous>, transform_indices = @transform_2, window_bounds = array<i64: 25, 64>}, {pipeline_mode = #tpu.pipeline_mode<synchronous>, transform_indices = @transform_3, window_bounds = array<i64: 1, 64>}, {pipeline_mode = #tpu.pipeline_mode<synchronous>, transform_indices = @transform_4, window_bounds = array<i64: 64, 128>}, {pipeline_mode = #tpu.pipeline_mode<synchronous>, transform_indices = @transform_5, window_bounds = array<i64: 1, 128>}, {pipeline_mode = #tpu.pipeline_mode<synchronous>, transform_indices = @transform_6, window_bounds = array<i64: 128, 128>}, {pipeline_mode = #tpu.pipeline_mode<synchronous>, transform_indices = @transform_7, window_bounds = array<i64: 1, 128>}, {pipeline_mode = #tpu.pipeline_mode<synchronous>, transform_indices = @transform_8, window_bounds = array<i64: 128, 64>}, {pipeline_mode = #tpu.pipeline_mode<synchronous>, transform_indices = @transform_9, window_bounds = array<i64: 1, 64>}, {pipeline_mode = #tpu.pipeline_mode<synchronous>, transform_indices = @transform_10, window_bounds = array<i64: 64, 128>}, {pipeline_mode = #tpu.pipeline_mode<synchronous>, transform_indices = @transform_11, window_bounds = array<i64: 1, 128>}, {transform_indices = @transform_12, window_bounds = array<i64: 16, 128>}]} {
    %c0 = arith.constant 0 : index
    %c0_0 = arith.constant 0 : index
    %0 = vector.load %arg1[%c0, %c0_0] : memref<16x25xf32, #tpu.memory_space<vmem>>, vector<16x25xf32>
    %1 = arith.truncf %0 : vector<16x25xf32> to vector<16x25xbf16>
    %c0_1 = arith.constant 0 : index
    %c0_2 = arith.constant 0 : index
    %2 = vector.load %arg3[%c0_1, %c0_2] : memref<25x64xbf16, #tpu.memory_space<vmem>>, vector<25x64xbf16>
    %cst = arith.constant dense<0.000000e+00> : vector<16x64xf32>
    %3 = tpu.matmul %1, %2, %cst {dimension_numbers = #tpu.dot_dimension_numbers<[1], [0], [0], [1], [0, 0, 1, 1], [], []>} : vector<16x25xbf16>, vector<25x64xbf16>, vector<16x64xf32> -> vector<16x64xf32>
    %c0_3 = arith.constant 0 : index
    %c0_4 = arith.constant 0 : index
    %4 = vector.load %arg4[%c0_3, %c0_4] : memref<1x64xf32, #tpu.memory_space<vmem>>, vector<1x64xf32>
    %5 = vector.broadcast %4 : vector<1x64xf32> to vector<16x64xf32>
    %6 = arith.addf %3, %5 : vector<16x64xf32>
    %cst_5 = arith.constant 5.000000e-01 : f32
    %7 = vector.broadcast %cst_5 : f32 to vector<16x64xf32>
    %8 = arith.mulf %7, %6 : vector<16x64xf32>
    %cst_6 = arith.constant 0.707106769 : f32
    %9 = vector.broadcast %cst_6 : f32 to vector<16x64xf32>
    %10 = arith.mulf %6, %9 : vector<16x64xf32>
    %11 = math.erf %10 : vector<16x64xf32>
    %cst_7 = arith.constant 1.000000e+00 : f32
    %12 = vector.broadcast %cst_7 : f32 to vector<16x64xf32>
    %13 = arith.addf %12, %11 : vector<16x64xf32>
    %14 = arith.mulf %8, %13 : vector<16x64xf32>
    %15 = arith.truncf %14 : vector<16x64xf32> to vector<16x64xbf16>
    %c0_8 = arith.constant 0 : index
    %c0_9 = arith.constant 0 : index
    %16 = vector.load %arg5[%c0_8, %c0_9] : memref<64x128xbf16, #tpu.memory_space<vmem>>, vector<64x128xbf16>
    %cst_10 = arith.constant dense<0.000000e+00> : vector<16x128xf32>
    %17 = tpu.matmul %15, %16, %cst_10 {dimension_numbers = #tpu.dot_dimension_numbers<[1], [0], [0], [1], [0, 0, 1, 1], [], []>} : vector<16x64xbf16>, vector<64x128xbf16>, vector<16x128xf32> -> vector<16x128xf32>
    %c0_11 = arith.constant 0 : index
    %c0_12 = arith.constant 0 : index
    %18 = vector.load %arg6[%c0_11, %c0_12] : memref<1x128xf32, #tpu.memory_space<vmem>>, vector<1x128xf32>
    %19 = vector.broadcast %18 : vector<1x128xf32> to vector<16x128xf32>
    %20 = arith.addf %17, %19 : vector<16x128xf32>
    %cst_13 = arith.constant 5.000000e-01 : f32
    %21 = vector.broadcast %cst_13 : f32 to vector<16x128xf32>
    %22 = arith.mulf %21, %20 : vector<16x128xf32>
    %cst_14 = arith.constant 0.707106769 : f32
    %23 = vector.broadcast %cst_14 : f32 to vector<16x128xf32>
    %24 = arith.mulf %20, %23 : vector<16x128xf32>
    %25 = math.erf %24 : vector<16x128xf32>
    %cst_15 = arith.constant 1.000000e+00 : f32
    %26 = vector.broadcast %cst_15 : f32 to vector<16x128xf32>
    %27 = arith.addf %26, %25 : vector<16x128xf32>
    %28 = arith.mulf %22, %27 : vector<16x128xf32>
    %c0_16 = arith.constant 0 : index
    %c0_17 = arith.constant 0 : index
    %29 = vector.load %arg2[%c0_16, %c0_17] : memref<16x128xf32, #tpu.memory_space<vmem>>, vector<16x128xf32>
    %30 = arith.addf %28, %29 : vector<16x128xf32>
    %31 = arith.truncf %30 : vector<16x128xf32> to vector<16x128xbf16>
    %c0_18 = arith.constant 0 : index
    %c0_19 = arith.constant 0 : index
    %32 = vector.load %arg7[%c0_18, %c0_19] : memref<128x128xbf16, #tpu.memory_space<vmem>>, vector<128x128xbf16>
    %cst_20 = arith.constant dense<0.000000e+00> : vector<16x128xf32>
    %33 = tpu.matmul %31, %32, %cst_20 {dimension_numbers = #tpu.dot_dimension_numbers<[1], [0], [0], [1], [0, 0, 1, 1], [], []>} : vector<16x128xbf16>, vector<128x128xbf16>, vector<16x128xf32> -> vector<16x128xf32>
    %c0_21 = arith.constant 0 : index
    %c0_22 = arith.constant 0 : index
    %34 = vector.load %arg8[%c0_21, %c0_22] : memref<1x128xf32, #tpu.memory_space<vmem>>, vector<1x128xf32>
    %35 = vector.broadcast %34 : vector<1x128xf32> to vector<16x128xf32>
    %36 = arith.addf %33, %35 : vector<16x128xf32>
    %cst_23 = arith.constant 5.000000e-01 : f32
    %37 = vector.broadcast %cst_23 : f32 to vector<16x128xf32>
    %38 = arith.mulf %37, %36 : vector<16x128xf32>
    %cst_24 = arith.constant 0.707106769 : f32
    %39 = vector.broadcast %cst_24 : f32 to vector<16x128xf32>
    %40 = arith.mulf %36, %39 : vector<16x128xf32>
    %41 = math.erf %40 : vector<16x128xf32>
    %cst_25 = arith.constant 1.000000e+00 : f32
    %42 = vector.broadcast %cst_25 : f32 to vector<16x128xf32>
    %43 = arith.addf %42, %41 : vector<16x128xf32>
    %44 = arith.mulf %38, %43 : vector<16x128xf32>
    %45 = arith.truncf %44 : vector<16x128xf32> to vector<16x128xbf16>
    %c0_26 = arith.constant 0 : index
    %c0_27 = arith.constant 0 : index
    %46 = vector.load %arg9[%c0_26, %c0_27] : memref<128x64xbf16, #tpu.memory_space<vmem>>, vector<128x64xbf16>
    %cst_28 = arith.constant dense<0.000000e+00> : vector<16x64xf32>
    %47 = tpu.matmul %45, %46, %cst_28 {dimension_numbers = #tpu.dot_dimension_numbers<[1], [0], [0], [1], [0, 0, 1, 1], [], []>} : vector<16x128xbf16>, vector<128x64xbf16>, vector<16x64xf32> -> vector<16x64xf32>
    %c0_29 = arith.constant 0 : index
    %c0_30 = arith.constant 0 : index
    %48 = vector.load %arg10[%c0_29, %c0_30] : memref<1x64xf32, #tpu.memory_space<vmem>>, vector<1x64xf32>
    %49 = vector.broadcast %48 : vector<1x64xf32> to vector<16x64xf32>
    %50 = arith.addf %47, %49 : vector<16x64xf32>
    %cst_31 = arith.constant 5.000000e-01 : f32
    %51 = vector.broadcast %cst_31 : f32 to vector<16x64xf32>
    %52 = arith.mulf %51, %50 : vector<16x64xf32>
    %cst_32 = arith.constant 0.707106769 : f32
    %53 = vector.broadcast %cst_32 : f32 to vector<16x64xf32>
    %54 = arith.mulf %50, %53 : vector<16x64xf32>
    %55 = math.erf %54 : vector<16x64xf32>
    %cst_33 = arith.constant 1.000000e+00 : f32
    %56 = vector.broadcast %cst_33 : f32 to vector<16x64xf32>
    %57 = arith.addf %56, %55 : vector<16x64xf32>
    %58 = arith.mulf %52, %57 : vector<16x64xf32>
    %59 = arith.addf %58, %14 : vector<16x64xf32>
    %60 = arith.truncf %59 : vector<16x64xf32> to vector<16x64xbf16>
    %c0_34 = arith.constant 0 : index
    %c0_35 = arith.constant 0 : index
    %61 = vector.load %arg11[%c0_34, %c0_35] : memref<64x128xbf16, #tpu.memory_space<vmem>>, vector<64x128xbf16>
    %cst_36 = arith.constant dense<0.000000e+00> : vector<16x128xf32>
    %62 = tpu.matmul %60, %61, %cst_36 {dimension_numbers = #tpu.dot_dimension_numbers<[1], [0], [0], [1], [0, 0, 1, 1], [], []>} : vector<16x64xbf16>, vector<64x128xbf16>, vector<16x128xf32> -> vector<16x128xf32>
    %c0_37 = arith.constant 0 : index
    %c0_38 = arith.constant 0 : index
    %63 = vector.load %arg12[%c0_37, %c0_38] : memref<1x128xf32, #tpu.memory_space<vmem>>, vector<1x128xf32>
    %64 = vector.broadcast %63 : vector<1x128xf32> to vector<16x128xf32>
    %65 = arith.addf %62, %64 : vector<16x128xf32>
    %c0_39 = arith.constant 0 : index
    %c0_40 = arith.constant 0 : index
    %66 = vector.load %arg13[%c0_39, %c0_40] : memref<16x128xf32, #tpu.memory_space<vmem>>, vector<16x128xf32>
    tpu.vector_store %arg13[%c0_39, %c0_40], %65 {strides = array<i32>} : memref<16x128xf32, #tpu.memory_space<vmem>>, vector<16x128xf32>,
    return
  }
  func.func @transform_0(%arg0: i32) -> (i32, i32) {
    %c0_i32 = arith.constant 0 : i32
    %c0_i32_0 = arith.constant 0 : i32
    return %arg0, %c0_i32 : i32, i32
  }
  func.func @transform_1(%arg0: i32) -> (i32, i32) {
    %c0_i32 = arith.constant 0 : i32
    %c0_i32_0 = arith.constant 0 : i32
    return %arg0, %c0_i32 : i32, i32
  }
  func.func @transform_2(%arg0: i32) -> (i32, i32) {
    %c0_i32 = arith.constant 0 : i32
    %c0_i32_0 = arith.constant 0 : i32
    %c0_i32_1 = arith.constant 0 : i32
    return %c0_i32, %c0_i32_0 : i32, i32
  }
  func.func @transform_3(%arg0: i32) -> (i32, i32) {
    %c0_i32 = arith.constant 0 : i32
    %c0_i32_0 = arith.constant 0 : i32
    %c0_i32_1 = arith.constant 0 : i32
    return %c0_i32, %c0_i32_0 : i32, i32
  }
  func.func @transform_4(%arg0: i32) -> (i32, i32) {
    %c0_i32 = arith.constant 0 : i32
    %c0_i32_0 = arith.constant 0 : i32
    %c0_i32_1 = arith.constant 0 : i32
    return %c0_i32, %c0_i32_0 : i32, i32
  }
  func.func @transform_5(%arg0: i32) -> (i32, i32) {
    %c0_i32 = arith.constant 0 : i32
    %c0_i32_0 = arith.constant 0 : i32
    %c0_i32_1 = arith.constant 0 : i32
    return %c0_i32, %c0_i32_0 : i32, i32
  }
  func.func @transform_6(%arg0: i32) -> (i32, i32) {
    %c0_i32 = arith.constant 0 : i32
    %c0_i32_0 = arith.constant 0 : i32
    %c0_i32_1 = arith.constant 0 : i32
    return %c0_i32, %c0_i32_0 : i32, i32
  }
  func.func @transform_7(%arg0: i32) -> (i32, i32) {
    %c0_i32 = arith.constant 0 : i32
    %c0_i32_0 = arith.constant 0 : i32
    %c0_i32_1 = arith.constant 0 : i32
    return %c0_i32, %c0_i32_0 : i32, i32
  }
  func.func @transform_8(%arg0: i32) -> (i32, i32) {
    %c0_i32 = arith.constant 0 : i32
    %c0_i32_0 = arith.constant 0 : i32
    %c0_i32_1 = arith.constant 0 : i32
    return %c0_i32, %c0_i32_0 : i32, i32
  }
  func.func @transform_9(%arg0: i32) -> (i32, i32) {
    %c0_i32 = arith.constant 0 : i32
    %c0_i32_0 = arith.constant 0 : i32
    %c0_i32_1 = arith.constant 0 : i32
    return %c0_i32, %c0_i32_0 : i32, i32
  }
  func.func @transform_10(%arg0: i32) -> (i32, i32) {
    %c0_i32 = arith.constant 0 : i32
    %c0_i32_0 = arith.constant 0 : i32
    %c0_i32_1 = arith.constant 0 : i32
    return %c0_i32, %c0_i32_0 : i32, i32
  }
  func.func @transform_11(%arg0: i32) -> (i32, i32) {
    %c0_i32 = arith.constant 0 : i32
    %c0_i32_0 = arith.constant 0 : i32
    %c0_i32_1 = arith.constant 0 : i32
    return %c0_i32, %c0_i32_0 : i32, i32
  }
  func.func @transform_12(%arg0: i32) -> (i32, i32) {
    %c0_i32 = arith.constant 0 : i32
    %c0_i32_0 = arith.constant 0 : i32
    return %arg0, %c0_i32 : i32, i32
  }
}

</mosaic_0001>

<bundles_post_ra>
// kernel: tpu_custom_call.1
= control target key start
LH: loop header
LB: loop body
LE: loop exit
PB: predicated region body
PF: predicated region fallthrough
CT: control target
= control target key end

     0   :  { %17 = vsyncpa [#allocation3], 0  ;;  %s1158_s0 = inlined_call_operand.hbm [shape: f32[16,25], index: 0, kind: input, shape index: {}]   ;;  %s1159_s1 = inlined_call_operand.hbm [shape: f32[16,128], index: 1, kind: input, shape index: {}]   ;;  %s1160_s2 = inlined_call_operand.hbm [shape: bf16[25,64], index: 2, kind: input, shape index: {}]   ;;  %s1161_s3 = inlined_call_operand.vmem [shape: f32[1,64], index: 3, kind: input, shape index: {}]   ;;  %s1162_s4 = inlined_call_operand.vmem [shape: bf16[64,128], index: 4, kind: input, shape index: {}]   ;;  %s1163_s5 = inlined_call_operand.vmem [shape: f32[1,128], index: 5, kind: input, shape index: {}]   ;;  %s1164_s6 = inlined_call_operand.vmem [shape: bf16[128,128], index: 6, kind: input, shape index: {}]   ;;  %s1165_s7 = inlined_call_operand.vmem [shape: f32[1,128], index: 7, kind: input, shape index: {}]   ;;  %s1166_s8 = inlined_call_operand.vmem [shape: bf16[128,64], index: 8, kind: input, shape index: {}]   ;;  %s1167_s9 = inlined_call_operand.vmem [shape: f32[1,64], index: 9, kind: input, shape index: {}]   ;;  %s1168_s10 = inlined_call_operand.hbm [shape: bf16[64,128], index: 10, kind: input, shape index: {}]   ;;  %s1169_s11 = inlined_call_operand.vmem [shape: f32[1,128], index: 11, kind: input, shape index: {}]   ;;  %s1170_s12 = inlined_call_operand.hbm [shape: f32[16,128], index: 12, kind: output, shape index: {}]  }
   0x1   :  { %18 = vsyncpa [#allocation6], 0 }
   0x2   :  { %19 = vsyncpa [#allocation9], 0 }
   0x3   :  { %20 = vsyncpa [#allocation4], 0  ;;  %s936_s21 = smov [#allocation5]   ;;  %s937_s23 = smov [#allocation2]  }
   0x4   :  { %s38_s22 = sshll.u32 %s936_s21, 4  ;;  %s26_s24 = sshll.u32 %s937_s23, 4  ;;  %s39_s22 = int_to_ptr.vmem [resolvable:$true] %s38_s22  ;;  %s27_s24 = int_to_ptr.vmem [resolvable:$true] %s26_s24 }
   0x5   :  { %s836_s25 = scalar_lea.vmem %s39_s22, 256  ;;  %p841_p1 = scmp.lt.s32.totalorder %s39_s22, %s39_s22 }
   0x6   :  { %p837_p0 = scmp.ne.s32.totalorder %s39_s22, %s836_s25  ;;  %p842_p2 = scmp.lt.s32.totalorder %s836_s25, %s836_s25 }
   0x8   :  { %p843_p3 = por %p842_p2, %p841_p1 }
   0xa   :  { %p844_p4 = pnand %p843_p3, %p837_p0 }
   0xc   :  { %847 = shalt.err (!%p844_p4)
}
   0xd   :  { %s938_s26 = smov 128   ;;  %s939_s27 = smov 8  }
   0xe   :  { %44 = dma.hbm_to_vmem [thread:$0]  %s1159_s1, 256, %s39_s22, [#allocation6], %s938_s26, %s938_s26, %s939_s27  }
   0xf   :  { %s856_s30 = scalar_lea.vmem %s27_s24, 256  ;;  %p861_p6 = scmp.lt.s32.totalorder %s27_s24, %s27_s24 }
  0x10   :  { %p857_p5 = scmp.ne.s32.totalorder %s27_s24, %s856_s30  ;;  %p862_p7 = scmp.lt.s32.totalorder %s856_s30, %s856_s30 }
  0x12   :  { %p863_p8 = por %p862_p7, %p861_p6 }
  0x14   :  { %p864_p9 = pnand %p863_p8, %p857_p5 }
  0x16   :  { %867 = shalt.err (!%p864_p9)
}
  0x17   :  { %32 = dma.hbm_to_vmem [thread:$0]  %s1158_s0, 256, %s27_s24, [#allocation3], %s938_s26, %s938_s26, %s939_s27  }
  0x18   :  { %s940_s15 = smov [#allocation7]  }
  0x19   :  { %s50_s16 = sshll.u32 %s940_s15, 4  ;;  %s51_s16 = int_to_ptr.vmem [resolvable:$true] %s50_s16 }
  0x1a   :  { %s876_s17 = scalar_lea.vmem %s51_s16, 256  ;;  %p881_p11 = scmp.lt.s32.totalorder %s51_s16, %s51_s16 }
  0x1b   :  { %p877_p10 = scmp.ne.s32.totalorder %s51_s16, %s876_s17  ;;  %p882_p12 = scmp.lt.s32.totalorder %s876_s17, %s876_s17 }
  0x1d   :  { %p883_p13 = por %p882_p12, %p881_p11 }
  0x1f   :  { %p884_p0 = pnand %p883_p13, %p877_p10 }
  0x21   :  { %887 = shalt.err (!%p884_p0)
}
  0x22   :  { %s941_s1 = smov 64   ;;  %s942_s18 = smov 4  }
  0x23   :  { %56 = dma.hbm_to_vmem [thread:$0]  %s1160_s2, 256, %s51_s16, [#allocation6], %s941_s1, %s941_s1, %s942_s18  }
  0x24   :  { %s943_s21 = smov [#allocation8]  }
  0x25   :  { %s76_s22 = sshll.u32 %s943_s21, 4  ;;  %s77_s22 = int_to_ptr.vmem [resolvable:$true] %s76_s22 }
  0x26   :  { %s896_s0 = scalar_lea.vmem %s77_s22, 512  ;;  %p901_p2 = scmp.lt.s32.totalorder %s77_s22, %s77_s22 }
  0x27   :  { %p897_p1 = scmp.ne.s32.totalorder %s77_s22, %s896_s0  ;;  %p902_p3 = scmp.lt.s32.totalorder %s896_s0, %s896_s0 }
  0x29   :  { %p903_p4 = por %p902_p3, %p901_p2 }
  0x2b   :  { %p904_p5 = pnand %p903_p4, %p897_p1 }
  0x2d   :  { %907 = shalt.err (!%p904_p5)
}
  0x2e   :  { %82 = dma.hbm_to_vmem [thread:$0]  %s1168_s10, 512, %s77_s22, [#allocation9], %s941_s1, %s941_s1, %s942_s18  }
  0x2f   :  { %928 = dma.done.wait [#allocation3], 256  }
  0x30   :  { %929 = vsyncadd [#allocation3], 4294967040 }
  0x31   :  { %930 = dma.done.wait [#allocation6], 512  }
  0x32   :  { %931 = vsyncadd [#allocation6], 4294966784 }
  0x33   :  { %932 = dma.done.wait [#allocation9], 512  }
  0x34   :  { %933 = vsyncadd [#allocation9], 4294966784  ;;  %vm127_vm0 = vcmask 1043456   ;;  %v944_v0 = vmov 0.0   ;;  %vm945_vm1 = vmmov 0   ;;  %vm128_vm2 = vcmask 1044480  }
  0x35   :  { %702 = vmatprep.subr.bf16.mxu0 %v944_v0  ;;  %710 = vmatprep.subr.bf16.mxu1 %v944_v0  ;;  %v946_v1 = vmov 65535   ;;  %v786_v4 = vld [vmem:[#allocation7 + $0x8] sm:$0x1f]   ;;  %v787_v6 = vld [vmem:[#allocation7] sm:$0xff]   ;;  %vm123_vm3 = vcmask 203776   ;;  %v788_v10 = vld [vmem:[%s1162_s4 + $0x18] sm:$0xff]  }
  0x36   :  { %706 = vmatprep.mubr.msk.bf16.mxu0 %vm945_vm1, %v944_v0  ;;  %718 = vmatprep.mubr.msk.bf16.mxu1 %vm945_vm1, %v944_v0  ;;  %v129_v2 = vsel %vm127_vm0, 4294967295, %v946_v1  ;;  %v98_v7 = vld [vmem:[#allocation2] sm:$0xff]  ;;  %v99_v8 = vld [vmem:[#allocation2 + $0x8] sm:$0xff]  ;;  %v789_v11 = vld [vmem:[%s1162_s4 + $0x10] sm:$0xff]   ;;  %vm225_vm4 = vcmask 523264   ;;  %s947_s10 = smov [#allocation10]  }
  0x37   :  { %v130_v3 = vsel %vm128_vm2, %v129_v2, 0  ;;  %v100_v9 = vpack.c.bf16 %v99_v8, %v98_v7  ;;  %711 = vmatpush3.bf16.msra.mxu1 %v788_v10  ;;  %v790_v12 = vld [vmem:[%s1162_s4 + $0x8] sm:$0xff]   ;;  %v791_v13 = vld [vmem:[%s1162_s4] sm:$0xff]   ;;  %v792_v32 = vld [vmem:[%s1164_s6 + $0x38] sm:$0xff]   ;;  %s623_s25 = sshll.u32 %s947_s10, 4  ;;  %s624_s25 = int_to_ptr.vmem [resolvable:$true] %s623_s25 }
  0x38   :  { %v132_v5 = vand.u32 %v786_v4, %v130_v3  ;;  %712 = vmatprep.subr.bf16.mxu1 %v944_v0  ;;  %v637_v14 = vld [vmem:[%s1161_s3] ss:$0 sm:$0xff]  ;;  %v793_v33 = vld [vmem:[%s1164_s6 + $0x30] sm:$0xff]   ;;  %v794_v34 = vld [vmem:[%s1164_s6 + $0x28] sm:$0xff]   ;;  %s908_s28 = scalar_lea.vmem %s624_s25, 256  ;;  %p913_p7 = scmp.lt.s32.totalorder %s624_s25, %s624_s25 }
  0x39   :  { %v795_v35 = vld [vmem:[%s1164_s6 + $0x20] sm:$0xff]   ;;  %v796_v36 = vld [vmem:[%s1164_s6 + $0x18] sm:$0xff]   ;;  %v797_v37 = vld [vmem:[%s1164_s6 + $0x10] sm:$0xff]   ;;  %p909_p6 = scmp.ne.s32.totalorder %s624_s25, %s908_s28  ;;  %p914_p8 = scmp.lt.s32.totalorder %s908_s28, %s908_s28 }
  0x3a   :  { %703 = vmatpush3.bf16.msra.mxu0 %v132_v5  ;;  %v798_v38 = vld [vmem:[%s1164_s6 + $0x8] sm:$0xff]   ;;  %v799_v39 = vld [vmem:[%s1164_s6] sm:$0xff]   ;;  %v800_v40 = vld [vmem:[%s1166_s8 + $0x38] sm:$0xff]  }
  0x3b   :  { %704 = vmatprep.subr.bf16.mxu0 %v944_v0  ;;  %713 = vmatpush3.bf16.msra.mxu1 %v789_v11  ;;  %v641_v41 = vld [vmem:[%s1163_s5] ss:$0 sm:$0xff]  ;;  %v280_v57 = vld [vmem:[#allocation5] sm:$0xff]  ;;  %v281_v58 = vld [vmem:[#allocation5 + $0x8] sm:$0xff]  ;;  %p915_p9 = por %p914_p8, %p913_p7 }
  0x3c   :  { %714 = vmatprep.subr.bf16.mxu1 %v944_v0  ;;  %v801_v63 = vld [vmem:[%s1166_s8 + $0x30] sm:$0xff]   ;;  %v802_v1 = vld [vmem:[%s1166_s8 + $0x28] sm:$0xff]   ;;  %v803_v2 = vld [vmem:[%s1166_s8 + $0x20] sm:$0xff]  }
  0x3d   :  { %v804_v3 = vld [vmem:[%s1166_s8 + $0x18] sm:$0xff]   ;;  %v805_v4 = vld [vmem:[%s1166_s8 + $0x10] sm:$0xff]   ;;  %v806_v5 = vld [vmem:[%s1166_s8 + $0x8] sm:$0xff]   ;;  %p916_p10 = pnand %p915_p9, %p909_p6 }
  0x3e   :  { %705 = vmatpush3.bf16.msra.mxu0 %v787_v6  ;;  %v807_v6 = vld [vmem:[%s1166_s8] sm:$0xff]  }
  0x3f   :  { %722 = vmatprep.subr.bf16.mxu0 %v944_v0  ;;  %715 = vmatpush3.bf16.msra.mxu1 %v790_v12  ;;  %v647_v7 = vld [vmem:[%s1165_s7] ss:$0 sm:$0xff] }
  0x40   :  { %716 = vmatprep.subr.bf16.mxu1 %v944_v0 }
  0x41   :  { %707 = vmatmul.mubr.msk.bf16.vlgmr.msra.gmra.mxu0 %vm123_vm3, %v100_v9 }
  0x42   :  { %738 = vmatprep.mubr.msk.bf16.mxu0 %vm945_vm1, %v944_v0  ;;  %723 = vmatpush3.bf16.msra.mxu0 %v792_v32 }
  0x43   :  { %717 = vmatpush3.bf16.msra.mxu1 %v791_v13  ;;  %724 = vmatprep.subr.bf16.mxu0 %v944_v0 }
  0x44   :  { %742 = vmatprep.subr.bf16.mxu1 %v944_v0 }
  0x46   :  { %725 = vmatpush3.bf16.msra.mxu0 %v793_v33 }
  0x47   :  { %726 = vmatprep.subr.bf16.mxu0 %v944_v0 }
  0x4a   :  { %727 = vmatpush3.bf16.msra.mxu0 %v794_v34 }
  0x4b   :  { %728 = vmatprep.subr.bf16.mxu0 %v944_v0 }
  0x4e   :  { %729 = vmatpush3.bf16.msra.mxu0 %v795_v35 }
  0x4f   :  { %730 = vmatprep.subr.bf16.mxu0 %v944_v0 }
  0x52   :  { %731 = vmatpush3.bf16.msra.mxu0 %v796_v36 }
  0x53   :  { %732 = vmatprep.subr.bf16.mxu0 %v944_v0 }
  0x56   :  { %733 = vmatpush3.bf16.msra.mxu0 %v797_v37 }
  0x57   :  { %734 = vmatprep.subr.bf16.mxu0 %v944_v0 }
  0x5a   :  { %735 = vmatpush3.bf16.msra.mxu0 %v798_v38 }
  0x5b   :  { %736 = vmatprep.subr.bf16.mxu0 %v944_v0 }
  0x5e   :  { %737 = vmatpush3.bf16.msra.mxu0 %v799_v39 }
  0x5f   :  { %762 = vmatprep.subr.bf16.mxu0 %v944_v0 }
 0x101   :  { %v168_v15 = vpop.f32.mrf.mxu0 }
 0x102   :  { %v169_v16 = vadd.f32 %v637_v14, %v168_v15 }
 0x103   :  { %v708_v17 = vpop.f32.mrf.mxu0 }
 0x104   :  { %v177_v18 = vmul.f32 0.70710677, %v169_v16  ;;  %v175_v26 = vmul.f32 0.5, %v169_v16 }
 0x105   :  { %v171_v19 = vpop.f32.mrf.mxu0 }
 0x106   :  { %812 = verf.f32 %v177_v18  ;;  %v172_v20 = vadd.f32 %v637_v14, %v171_v19 }
 0x107   :  { %v709_v21 = vpop.f32.mrf.mxu0 }
 0x108   :  { %v178_v22 = vmul.f32 0.70710677, %v172_v20  ;;  %v176_v27 = vmul.f32 0.5, %v172_v20 }
 0x10a   :  { %814 = verf.f32 %v178_v22 }
 0x113   :  { %v813_v23 = vpop.eup %812 }
 0x114   :  { %v181_v24 = vadd.f32 1.0, %v813_v23 }
 0x116   :  { %v1060_v29 = vmul.f32 %v181_v24, %v175_v26  ;;  %v809_v26 = vld [vmem:[#allocation8 + $0x10] sm:$0xff]  }
 0x117   :  { %v815_v25 = vpop.eup %814 }
 0x118   :  { %v182_v28 = vadd.f32 1.0, %v815_v25  ;;  %v808_v25 = vld [vmem:[#allocation8 + $0x18] sm:$0xff]  }
 0x11a   :  { %v1062_v30 = vmul.f32 %v182_v28, %v176_v27  ;;  %v810_v27 = vld [vmem:[#allocation8 + $0x8] sm:$0xff]   ;;  %v811_v28 = vld [vmem:[#allocation8] sm:$0xff]  }
 0x11c   :  { %v185_v31 = vpack.c.bf16 %v1062_v30, %v1060_v29 }
 0x11e   :  { %719 = vmatmul.mubr.msk.bf16.vlgmr.msra.gmra.mxu1 %vm225_vm4, %v185_v31  ;;  %v656_v31 = vld [vmem:[%s1167_s9] ss:$0 sm:$0xff] }
 0x11f   :  { %758 = vmatprep.mubr.msk.bf16.mxu1 %vm945_vm1, %v944_v0  ;;  %743 = vmatpush3.bf16.msra.mxu1 %v800_v40 }
 0x120   :  { %744 = vmatprep.subr.bf16.mxu1 %v944_v0 }
 0x123   :  { %745 = vmatpush3.bf16.msra.mxu1 %v801_v63 }
 0x124   :  { %746 = vmatprep.subr.bf16.mxu1 %v944_v0 }
 0x127   :  { %747 = vmatpush3.bf16.msra.mxu1 %v802_v1 }
 0x128   :  { %748 = vmatprep.subr.bf16.mxu1 %v944_v0 }
 0x12b   :  { %749 = vmatpush3.bf16.msra.mxu1 %v803_v2 }
 0x12c   :  { %750 = vmatprep.subr.bf16.mxu1 %v944_v0 }
 0x12f   :  { %751 = vmatpush3.bf16.msra.mxu1 %v804_v3 }
 0x130   :  { %752 = vmatprep.subr.bf16.mxu1 %v944_v0 }
 0x133   :  { %753 = vmatpush3.bf16.msra.mxu1 %v805_v4 }
 0x134   :  { %754 = vmatprep.subr.bf16.mxu1 %v944_v0 }
 0x137   :  { %755 = vmatpush3.bf16.msra.mxu1 %v806_v5 }
 0x138   :  { %756 = vmatprep.subr.bf16.mxu1 %v944_v0 }
 0x13b   :  { %757 = vmatpush3.bf16.msra.mxu1 %v807_v6 }
 0x1de   :  { %v263_v42 = vpop.f32.mrf.mxu1 }
 0x1df   :  { %v264_v43 = vadd.f32 %v641_v41, %v263_v42 }
 0x1e0   :  { %v720_v44 = vpop.f32.mrf.mxu1 }
 0x1e1   :  { %v272_v45 = vmul.f32 0.70710677, %v264_v43  ;;  %v270_v52 = vmul.f32 0.5, %v264_v43 }
 0x1e2   :  { %v266_v46 = vpop.f32.mrf.mxu1 }
 0x1e3   :  { %816 = verf.f32 %v272_v45  ;;  %v267_v47 = vadd.f32 %v641_v41, %v266_v46 }
 0x1e4   :  { %v721_v48 = vpop.f32.mrf.mxu1 }
 0x1e5   :  { %v273_v49 = vmul.f32 0.70710677, %v267_v47  ;;  %v271_v55 = vmul.f32 0.5, %v267_v47 }
 0x1e7   :  { %818 = verf.f32 %v273_v49 }
 0x1f0   :  { %v817_v50 = vpop.eup %816 }
 0x1f1   :  { %v276_v51 = vadd.f32 1.0, %v817_v50  ;;  %v665_v50 = vld [vmem:[%s1169_s11] ss:$0 sm:$0xff] }
 0x1f3   :  { %v278_v54 = vmul.f32 %v276_v51, %v270_v52 }
 0x1f4   :  { %v819_v53 = vpop.eup %818 }
 0x1f5   :  { %v277_v56 = vadd.f32 1.0, %v819_v53  ;;  %v282_v60 = vadd.f32 %v280_v57, %v278_v54 }
 0x1f7   :  { %v279_v59 = vmul.f32 %v277_v56, %v271_v55 }
 0x1f9   :  { %v283_v61 = vadd.f32 %v281_v58, %v279_v59 }
 0x1fb   :  { %v284_v62 = vpack.c.bf16 %v283_v61, %v282_v60 }
 0x1fd   :  { %739 = vmatmul.mubr.bf16.vlgmr.msra.gmra.mxu0 %v284_v62 }
 0x1fe   :  { %770 = vmatprep.mubr.msk.bf16.mxu0 %vm945_vm1, %v944_v0  ;;  %763 = vmatpush3.bf16.msra.mxu0 %v808_v25 }
 0x1ff   :  { %764 = vmatprep.subr.bf16.mxu0 %v944_v0 }
 0x202   :  { %765 = vmatpush3.bf16.msra.mxu0 %v809_v26 }
 0x203   :  { %766 = vmatprep.subr.bf16.mxu0 %v944_v0 }
 0x206   :  { %767 = vmatpush3.bf16.msra.mxu0 %v810_v27 }
 0x207   :  { %768 = vmatprep.subr.bf16.mxu0 %v944_v0 }
 0x20a   :  { %769 = vmatpush3.bf16.msra.mxu0 %v811_v28 }
 0x2bd   :  { %v390_v8 = vpop.f32.mrf.mxu0 }
 0x2be   :  { %v391_v9 = vadd.f32 %v647_v7, %v390_v8 }
 0x2bf   :  { %v740_v10 = vpop.f32.mrf.mxu0 }
 0x2c0   :  { %v399_v11 = vmul.f32 0.70710677, %v391_v9  ;;  %v397_v19 = vmul.f32 0.5, %v391_v9 }
 0x2c1   :  { %v393_v12 = vpop.f32.mrf.mxu0 }
 0x2c2   :  { %820 = verf.f32 %v399_v11  ;;  %v394_v13 = vadd.f32 %v647_v7, %v393_v12 }
 0x2c3   :  { %v741_v14 = vpop.f32.mrf.mxu0 }
 0x2c4   :  { %v400_v15 = vmul.f32 0.70710677, %v394_v13  ;;  %v398_v20 = vmul.f32 0.5, %v394_v13 }
 0x2c6   :  { %822 = verf.f32 %v400_v15 }
 0x2cf   :  { %v821_v16 = vpop.eup %820 }
 0x2d0   :  { %v403_v17 = vadd.f32 1.0, %v821_v16 }
 0x2d2   :  { %v405_v22 = vmul.f32 %v403_v17, %v397_v19 }
 0x2d3   :  { %v823_v18 = vpop.eup %822 }
 0x2d4   :  { %v404_v21 = vadd.f32 1.0, %v823_v18 }
 0x2d6   :  { %v406_v23 = vmul.f32 %v404_v21, %v398_v20 }
 0x2d8   :  { %v407_v24 = vpack.c.bf16 %v406_v23, %v405_v22 }
 0x2da   :  { %759 = vmatmul.mubr.bf16.vlgmr.msra.gmra.mxu1 %v407_v24 }
 0x39a   :  { %v513_v32 = vpop.f32.mrf.mxu1 }
 0x39b   :  { %v514_v33 = vadd.f32 %v656_v31, %v513_v32 }
 0x39c   :  { %v760_v34 = vpop.f32.mrf.mxu1 }
 0x39d   :  { %v522_v35 = vmul.f32 0.70710677, %v514_v33  ;;  %v520_v42 = vmul.f32 0.5, %v514_v33 }
 0x39e   :  { %v516_v36 = vpop.f32.mrf.mxu1 }
 0x39f   :  { %824 = verf.f32 %v522_v35  ;;  %v517_v37 = vadd.f32 %v656_v31, %v516_v36 }
 0x3a0   :  { %v761_v38 = vpop.f32.mrf.mxu1 }
 0x3a1   :  { %v523_v39 = vmul.f32 0.70710677, %v517_v37  ;;  %v521_v44 = vmul.f32 0.5, %v517_v37 }
 0x3a3   :  { %826 = verf.f32 %v523_v39 }
 0x3ac   :  { %v825_v40 = vpop.eup %824 }
 0x3ad   :  { %v526_v41 = vadd.f32 1.0, %v825_v40 }
 0x3af   :  { %v528_v43 = vmul.f32 %v526_v41, %v520_v42 }
 0x3b0   :  { %v827_v0 = vpop.eup %826 }
 0x3b1   :  { %v527_v45 = vadd.f32 1.0, %v827_v0  ;;  %v530_v47 = vadd.f32 %v528_v43, %v1060_v29 }
 0x3b3   :  { %v529_v46 = vmul.f32 %v527_v45, %v521_v44 }
 0x3b5   :  { %v531_v48 = vadd.f32 %v529_v46, %v1062_v30 }
 0x3b7   :  { %v532_v49 = vpack.c.bf16 %v531_v48, %v530_v47 }
 0x3b9   :  { %771 = vmatmul.mubr.msk.bf16.vlgmr.msra.gmra.mxu0 %vm225_vm4, %v532_v49 }
 0x479   :  { %v609_v51 = vpop.f32.mrf.mxu0 }
 0x47a   :  { %v610_v52 = vadd.f32 %v665_v50, %v609_v51 }
 0x47b   :  { %v772_v53 = vpop.f32.mrf.mxu0 }
 0x47c   :  { %616 = vst [vmem:[#allocation10] sm:$0xff] %v610_v52 }
 0x47d   :  { %v612_v54 = vpop.f32.mrf.mxu0 }
 0x47e   :  { %v613_v55 = vadd.f32 %v665_v50, %v612_v54 }
 0x47f   :  { %v773_v56 = vpop.f32.mrf.mxu0 }
 0x480   :  { %617 = vst [vmem:[#allocation10 + $0x8] sm:$0xff] %v613_v55 }
 0x481   :  { %919 = shalt.err (!%p916_p10)
}
 0x482   :  { %629 = dma.vmem_to_hbm [thread:$0]  %s624_s25, 256, %s1170_s12, [#allocation4], %s938_s26, %s938_s26, %s939_s27  }
 0x483   :  { %934 = dma.done.wait [#allocation4], 256  }
 0x484   :  { %935 = vsyncadd [#allocation4], 4294967040 }
 0x485   :  { %633 = vsyncpa [#allocation3], 1 }
 0x486   :  { %634 = vsyncpa [#allocation6], 1 }
 0x487   :  { %635 = vsyncpa [#allocation9], 1 }
 0x488   :  { %636 = vsyncpa [#allocation4], 1 }

</bundles_post_ra>
